<compile_context>
chip_gen: v6e
topology: v6e:2x2x1
jax: 0.10.0
libtpu: 0.0.40
codegen_flags: <defaults>
</compile_context>

<pallas_src>
import functools

import jax
import jax.numpy as jnp
from jax import lax
from jax.experimental import pallas as pl
from jax.experimental.pallas import tpu as pltpu


# ----------------------------------------------------------------------------
# Focal factor (scalar, applied in the wrapper).
# ----------------------------------------------------------------------------
def _focal_factor(logp, gamma):
    """(1 - exp(-logp)) ** gamma * logp, NaN-safe for integer gamma."""
    p = jnp.exp(-logp)
    d = 1.0 - p
    g = float(gamma)
    if g == int(g) and int(g) >= 0:
        f = jnp.ones_like(d)
        for _ in range(int(g)):          # unrolled multiplies; no pow/log(0)
            f = f * d
    else:
        f = jnp.where(d > 0.0, d ** g, 0.0)
    return f * logp


# ----------------------------------------------------------------------------
# Kernel: per-stripe partial sum of per-row NLL.
# ----------------------------------------------------------------------------
def _focal_nll_kernel(x_ref, t_ref, out_ref, acc_ref, *,
                      n_rows, tile_n, tiles_per_split):
    s = pl.program_id(0)          # stripe (TensorCore split) index
    i = pl.program_id(1)          # tile index within the stripe

    @pl.when(i == 0)
    def _init():
        acc_ref[...] = jnp.zeros_like(acc_ref)

    x = x_ref[...].astype(jnp.float32)                        # (tile_n, C)
    t = t_ref[...]                                            # (tile_n, 1) i32

    # Intended (unclamped) tile index; rows past N (padded last tile, or a
    # whole overrun tile whose block index was clamped) are masked to zero.
    tile_idx = s * tiles_per_split + i
    row = lax.broadcasted_iota(jnp.int32, (tile_n, 1), 0) + tile_idx * tile_n
    valid = row < n_rows                                      # (tile_n, 1)

    # Numerically stable log-sum-exp over the class axis.
    m = jnp.max(x, axis=-1, keepdims=True)                    # (tile_n, 1)
    lse = jnp.log(jnp.sum(jnp.exp(x - m), axis=-1, keepdims=True)) + m

    # Target-class logit via one-hot compare (no dynamic gather).
    cls = lax.broadcasted_iota(jnp.int32, x.shape, 1)         # (tile_n, C)
    tgt_logit = jnp.sum(jnp.where(cls == t, x, 0.0), axis=-1, keepdims=True)

    # INVARIANT: mask BEFORE accumulating — padded rows may carry inf/NaN lse.
    nll = jnp.where(valid, lse - tgt_logit, 0.0)              # per-sample CE
    acc_ref[...] += jnp.sum(nll, axis=0, keepdims=True)       # (1, 1) running

    @pl.when(i == pl.num_programs(1) - 1)
    def _finalize():
        out_ref[0] = acc_ref[...]                             # per-stripe sum


# ----------------------------------------------------------------------------
# Sizing helpers.
# ----------------------------------------------------------------------------
def _vmem_plan():
    """(vmem_limit_bytes, per-buffer f32 tile budget) from chip VMEM size."""
    try:
        cap = int(pltpu.get_tpu_info().vmem_capacity_bytes)
    except Exception:                       # be robust; assume v7x-like 64 MiB
        cap = 64 * 1024 * 1024
    vmem_limit = min((cap * 3) // 4, 100 * 1024 * 1024)   # 48 MiB v7x, 96 MiB v5e/v6e
    tile_budget_f32 = vmem_limit // 8                     # leave room for spill
    return vmem_limit, tile_budget_f32


def _choose_tile_n(n, c, packing, budget_f32_bytes):
    # Per-buffer budget in f32 terms (bounds compute intermediates too);
    # charge the lane-padded targets block (512 B/row/buffer) against it.
    per_row_bytes = c * 4 + 512
    tile = budget_f32_bytes // max(1, per_row_bytes)
    tile = max(packing, min(8192, (tile // packing) * packing))
    n_pad = ((n + packing - 1) // packing) * packing
    return min(tile, n_pad)


# ----------------------------------------------------------------------------
# Pallas entry point.
# ----------------------------------------------------------------------------
def focal_loss_pallas(logits, targets, gamma=2.0, tile_n=None, num_core_splits=2):
    """logits: (N, C) float (any dtype), targets: (N,) int -> scalar f32."""
    n, c = logits.shape
    itemsize = jnp.dtype(logits.dtype).itemsize
    packing = 8 * max(1, 4 // itemsize)            # 8 f32 / 16 bf16 / 32 int8
    vmem_limit, tile_budget = _vmem_plan()

    n_pad = ((n + packing - 1) // packing) * packing
    if tile_n is None:
        tile_n = _choose_tile_n(n, c, packing, tile_budget)
    else:
        tile_n = max(packing, (int(tile_n) // packing) * packing)
        tile_n = min(tile_n, n_pad)

    num_tiles = pl.cdiv(n, tile_n)
    splits = num_core_splits if (num_core_splits > 1 and num_tiles >= num_core_splits) else 1
    tiles_per_split = pl.cdiv(num_tiles, splits)
    grid = (splits, tiles_per_split)

    t2 = targets.reshape(n, 1).astype(jnp.int32)

    def row_block_map(s, i):
        # Clamp stripes that overrun the tile count to the last real block;
        # the kernel masks those rows out, so the data read is irrelevant.
        return (jnp.minimum(s * tiles_per_split + i, num_tiles - 1), 0)

    cost = pl.CostEstimate(
        flops=8 * n * c,
        transcendentals=n * c,
        bytes_accessed=n * c * itemsize + n * 4 + splits * 4,
    )

    kernel = functools.partial(
        _focal_nll_kernel, n_rows=n, tile_n=tile_n, tiles_per_split=tiles_per_split)

    partials = pl.pallas_call(
        kernel,
        out_shape=jax.ShapeDtypeStruct((splits, 1, 1), jnp.float32),
        grid_spec=pltpu.PrefetchScalarGridSpec(
            num_scalar_prefetch=0,
            grid=grid,
            in_specs=[
                pl.BlockSpec((tile_n, c), row_block_map),   # logits tile
                pl.BlockSpec((tile_n, 1), row_block_map),   # targets tile
            ],
            out_specs=pl.BlockSpec((1, 1, 1), lambda s, i: (s, 0, 0)),
            scratch_shapes=[pltpu.VMEM((1, 1), jnp.float32)],   # NLL accumulator
        ),
        compiler_params=pltpu.CompilerParams(
            dimension_semantics=("parallel", "arbitrary"),
            vmem_limit_bytes=vmem_limit,
        ),
        cost_estimate=cost,
    )(logits, t2)

    # Finalize in the wrapper: mean CE over all rows, then focal factor.
    # TODO(synk): for N >~ 1e7 consider compensated per-tile partial sums.
    logp = jnp.sum(partials) / jnp.float32(n)
    return _focal_factor(logp, gamma)


def focal_loss(logits, targets, gamma=2.0, **kwargs):
    """Dispatcher: tiny / very-narrow problems go to pure JAX (launch overhead
    and 128-lane waste dominate); everything else goes to the Pallas kernel."""
    n, c = logits.shape
    if n * c < (1 << 16) or c < 8:
        return focal_loss_ref(logits, targets, gamma)
    return focal_loss_pallas(logits, targets, gamma, **kwargs)


def focal_loss_ref(logits, targets, gamma=2.0):
    """Pure-JAX reference reproducing the PyTorch module."""
    logits = logits.astype(jnp.float32)
    logz = jax.nn.logsumexp(logits, axis=-1)
    tgt = jnp.take_along_axis(logits, targets[:, None], axis=-1)[:, 0]
    logp = jnp.mean(logz - tgt)                 # CE with reduction='mean'
    p = jnp.exp(-logp)
    return ((1.0 - p) ** gamma) * logp


if __name__ == "__main__":
    key = jax.random.PRNGKey(0)
    k1, k2, k3, k4, k5, k6 = jax.random.split(key, 6)

    # Case 1: small f32 problem, single tile, single stripe.
    N, C = 8, 16
    logits = jax.random.normal(k1, (N, C), dtype=jnp.float32)
    targets = jax.random.randint(k2, (N,), 0, C, dtype=jnp.int32)
    out = jax.block_until_ready(focal_loss_pallas(logits, targets, gamma=2.0))
    ref = focal_loss_ref(logits, targets, gamma=2.0)
    assert jnp.allclose(out, ref, atol=1e-5, rtol=1e-5), (out, ref)

    # Case 2: bf16 logits, ragged N (multi-tile + 2-way stripe split +
    # padded-row masking + bf16 sublane-packing rounding of tile_n).
    N2, C2 = 20, 32
    logits2 = jax.random.normal(k3, (N2, C2), dtype=jnp.bfloat16)
    targets2 = jax.random.randint(k4, (N2,), 0, C2, dtype=jnp.int32)
    out2 = jax.block_until_ready(focal_loss_pallas(logits2, targets2, gamma=2.0, tile_n=8))
    ref2 = focal_loss_ref(logits2, targets2, gamma=2.0)
    assert jnp.allclose(out2, ref2, atol=1e-4, rtol=1e-4), (out2, ref2)

    # Case 3: odd tile count (3 tiles over 2 stripes) -> exercises the clamped
    # index_map and a fully-masked overrun grid step.
    N3, C3 = 40, 128
    logits3 = jax.random.normal(k5, (N3, C3), dtype=jnp.float32)
    targets3 = jax.random.randint(k6, (N3,), 0, C3, dtype=jnp.int32)
    out3 = jax.block_until_ready(focal_loss_pallas(logits3, targets3, gamma=2.0, tile_n=16))
    ref3 = focal_loss_ref(logits3, targets3, gamma=2.0)
    assert jnp.allclose(out3, ref3, atol=1e-5, rtol=1e-5), (out3, ref3)

    print("KERNEL_OK")
</pallas_src>

<mosaic_0001>
module attributes {stable_mosaic.version = 11 : i64} {
  func.func @_focal_nll_kernel(%arg0: i32, %arg1: i32, %arg2: memref<8x16xf32, #tpu.memory_space<vmem>>, %arg3: memref<8x1xi32, #tpu.memory_space<vmem>>, %arg4: memref<1x1x1xf32, #tpu.memory_space<vmem>>, %arg5: memref<1x1xf32, #tpu.memory_space<vmem>>) attributes {dimension_semantics = [#tpu.dimension_semantics<parallel>, #tpu.dimension_semantics<arbitrary>], iteration_bounds = array<i64: 1, 1>, scalar_prefetch = 0 : i64, scratch_operands = 1 : i64, tpu.core_type = #tpu.core_type<tc>, window_params = [{transform_indices = @transform_0, window_bounds = array<i64: 8, 16>}, {transform_indices = @transform_1, window_bounds = array<i64: 8, 1>}, {transform_indices = @transform_2, window_bounds = array<i64: 1, 1, 1>}]} {
    %c0_i32 = arith.constant 0 : i32
    %0 = arith.cmpi eq, %arg1, %c0_i32 : i32
    %1 = arith.extui %0 : i1 to i32
    %c0_i32_0 = arith.constant 0 : i32
    %2 = arith.cmpi ne, %1, %c0_i32_0 : i32
    scf.if %2 {
      %cst_16 = arith.constant 0.000000e+00 : f32
      %40 = vector.broadcast %cst_16 : f32 to vector<1x1xf32>
      %c0_17 = arith.constant 0 : index
      %c0_18 = arith.constant 0 : index
      %41 = vector.load %arg5[%c0_17, %c0_18] : memref<1x1xf32, #tpu.memory_space<vmem>>, vector<1x1xf32>
      tpu.vector_store %arg5[%c0_17, %c0_18], %40 {strides = array<i32>} : memref<1x1xf32, #tpu.memory_space<vmem>>, vector<1x1xf32>,
    } else {
    }
    %c0 = arith.constant 0 : index
    %c0_1 = arith.constant 0 : index
    %3 = vector.load %arg2[%c0, %c0_1] : memref<8x16xf32, #tpu.memory_space<vmem>>, vector<8x16xf32>
    %c0_2 = arith.constant 0 : index
    %c0_3 = arith.constant 0 : index
    %4 = vector.load %arg3[%c0_2, %c0_3] : memref<8x1xi32, #tpu.memory_space<vmem>>, vector<8x1xi32>
    %c1_i32 = arith.constant 1 : i32
    %5 = arith.muli %arg0, %c1_i32 : i32
    %6 = arith.addi %5, %arg1 : i32
    %7 = tpu.iota {dimensions = array<i32: 0>} : vector<8x1xi32>
    %c8_i32 = arith.constant 8 : i32
    %8 = arith.muli %6, %c8_i32 : i32
    %9 = vector.broadcast %8 : i32 to vector<8x1xi32>
    %10 = arith.addi %7, %9 : vector<8x1xi32>
    %c8_i32_4 = arith.constant 8 : i32
    %11 = vector.broadcast %c8_i32_4 : i32 to vector<8x1xi32>
    %12 = arith.cmpi slt, %10, %11 : vector<8x1xi32>
    %cst = arith.constant dense<0xFF800000> : vector<8xf32>
    %13 = vector.multi_reduction <maximumf>, %3, %cst [1] : vector<8x16xf32> to vector<8xf32>
    %14 = vector.shape_cast %13 : vector<8xf32> to vector<8x1xf32>
    %15 = vector.broadcast %14 : vector<8x1xf32> to vector<8x16xf32>
    %16 = arith.subf %3, %15 : vector<8x16xf32>
    %17 = math.exp %16 : vector<8x16xf32>
    %cst_5 = arith.constant dense<0.000000e+00> : vector<8xf32>
    %18 = vector.multi_reduction <add>, %17, %cst_5 [1] : vector<8x16xf32> to vector<8xf32>
    %19 = vector.shape_cast %18 : vector<8xf32> to vector<8x1xf32>
    %20 = math.log %19 : vector<8x1xf32>
    %21 = arith.addf %20, %14 : vector<8x1xf32>
    %22 = tpu.iota {dimensions = array<i32: 1>} : vector<8x16xi32>
    %23 = vector.broadcast %4 : vector<8x1xi32> to vector<8x16xi32>
    %24 = arith.cmpi eq, %22, %23 : vector<8x16xi32>
    %cst_6 = arith.constant 0.000000e+00 : f32
    %25 = vector.broadcast %cst_6 : f32 to vector<8x16xf32>
    %26 = arith.select %24, %3, %25 : vector<8x16xi1>, vector<8x16xf32>
    %cst_7 = arith.constant dense<0.000000e+00> : vector<8xf32>
    %27 = vector.multi_reduction <add>, %26, %cst_7 [1] : vector<8x16xf32> to vector<8xf32>
    %28 = vector.shape_cast %27 : vector<8xf32> to vector<8x1xf32>
    %29 = arith.subf %21, %28 : vector<8x1xf32>
    %cst_8 = arith.constant 0.000000e+00 : f32
    %30 = vector.broadcast %cst_8 : f32 to vector<8x1xf32>
    %31 = arith.select %12, %29, %30 : vector<8x1xi1>, vector<8x1xf32>
    %c0_9 = arith.constant 0 : index
    %c0_10 = arith.constant 0 : index
    %32 = vector.load %arg5[%c0_9, %c0_10] : memref<1x1xf32, #tpu.memory_space<vmem>>, vector<1x1xf32>
    %cst_11 = arith.constant dense<0.000000e+00> : vector<1xf32>
    %33 = vector.multi_reduction <add>, %31, %cst_11 [0] : vector<8x1xf32> to vector<1xf32>
    %34 = vector.shape_cast %33 : vector<1xf32> to vector<1x1xf32>
    %35 = arith.addf %32, %34 : vector<1x1xf32>
    %c0_12 = arith.constant 0 : index
    %c0_13 = arith.constant 0 : index
    %36 = vector.load %arg5[%c0_12, %c0_13] : memref<1x1xf32, #tpu.memory_space<vmem>>, vector<1x1xf32>
    tpu.vector_store %arg5[%c0_12, %c0_13], %35 {strides = array<i32>} : memref<1x1xf32, #tpu.memory_space<vmem>>, vector<1x1xf32>,
    %c0_i32_14 = arith.constant 0 : i32
    %37 = arith.cmpi eq, %arg1, %c0_i32_14 : i32
    %38 = arith.extui %37 : i1 to i32
    %c0_i32_15 = arith.constant 0 : i32
    %39 = arith.cmpi ne, %38, %c0_i32_15 : i32
    scf.if %39 {
      %c0_16 = arith.constant 0 : index
      %c0_17 = arith.constant 0 : index
      %40 = vector.load %arg5[%c0_16, %c0_17] : memref<1x1xf32, #tpu.memory_space<vmem>>, vector<1x1xf32>
      %c0_18 = arith.constant 0 : index
      %c0_19 = arith.constant 0 : index
      %c0_20 = arith.constant 0 : index
      %41 = vector.load %arg4[%c0_18, %c0_19, %c0_20] : memref<1x1x1xf32, #tpu.memory_space<vmem>>, vector<1x1x1xf32>
      %42 = vector.shape_cast %41 : vector<1x1x1xf32> to vector<1x1xf32>
      %43 = vector.shape_cast %40 : vector<1x1xf32> to vector<1x1x1xf32>
      tpu.vector_store %arg4[%c0_18, %c0_19, %c0_20], %43 {strides = array<i32>} : memref<1x1x1xf32, #tpu.memory_space<vmem>>, vector<1x1x1xf32>,
    } else {
    }
    return
  }
  func.func @transform_0(%arg0: i32, %arg1: i32) -> (i32, i32) {
    %c1_i32 = arith.constant 1 : i32
    %0 = arith.muli %arg0, %c1_i32 : i32
    %1 = arith.addi %0, %arg1 : i32
    %c0_i32 = arith.constant 0 : i32
    %2 = arith.minsi %1, %c0_i32 : i32
    %c0_i32_0 = arith.constant 0 : i32
    %c0_i32_1 = arith.constant 0 : i32
    return %2, %c0_i32_0 : i32, i32
  }
  func.func @transform_1(%arg0: i32, %arg1: i32) -> (i32, i32) {
    %c1_i32 = arith.constant 1 : i32
    %0 = arith.muli %arg0, %c1_i32 : i32
    %1 = arith.addi %0, %arg1 : i32
    %c0_i32 = arith.constant 0 : i32
    %2 = arith.minsi %1, %c0_i32 : i32
    %c0_i32_0 = arith.constant 0 : i32
    %c0_i32_1 = arith.constant 0 : i32
    return %2, %c0_i32_0 : i32, i32
  }
  func.func @transform_2(%arg0: i32, %arg1: i32) -> (i32, i32, i32) {
    %c0_i32 = arith.constant 0 : i32
    %c0_i32_0 = arith.constant 0 : i32
    %c0_i32_1 = arith.constant 0 : i32
    return %arg0, %c0_i32, %c0_i32_0 : i32, i32, i32
  }
}

</mosaic_0001>

<bundles_post_ra>
// kernel: tpu_custom_call.1
= control target key start
LH: loop header
LB: loop body
LE: loop exit
PB: predicated region body
PF: predicated region fallthrough
CT: control target
= control target key end

     0   :  { %vm81_vm0 = vcmask 130048   ;;  %s210_s0 = inlined_call_operand.vmem [shape: f32[8,16], index: 0, kind: input, shape index: {}]   ;;  %s211_s1 = inlined_call_operand.vmem [shape: s32[8,1], index: 1, kind: input, shape index: {}]   ;;  %s212_s2 = inlined_call_operand.hbm [shape: f32[1,1,1], index: 2, kind: output, shape index: {}]  }
   0x1   :  { %v72_v0 = vld [vmem:[%s210_s0] sm:$0xff] }
   0x2   :  { %7 = vsyncpa [#allocation4], 0  ;;  %v82_v1 = vsel %vm81_vm0, %v72_v0, -inf  ;;  %v177_v2 = vmov 0   ;;  %v73_v3 = vld [vmem:[%s211_s1] sm:$0xff]  ;;  %v94_v7 = vlaneseq  ;;  %vm70_vm2 = vcmask 0  }
   0x3   :  { %150 = vset.pattern.permute.xlu0 %v177_v2  ;;  %v178_v14 = vmov 0.0   ;;  %s179_s0 = smov [#allocation3]  }
   0x4   :  { %83 = vmax.xlane.f32.xlu0 %v82_v1  ;;  %v95_v8 = vand.u32 127, %v94_v7  ;;  %71 = vst.msk [vmem:[#allocation2] sm:$0x1] %vm70_vm2, %v178_v14  ;;  %s127_s1 = sshll.u32 %s179_s0, 4  ;;  %s128_s1 = int_to_ptr.vmem [resolvable:$true] %s127_s1 }
   0x5   :  { %s155_s13 = scalar_lea.vmem %s128_s1, 16  ;;  %s159_s14 = scalar_lea.vmem %s128_s1, 32 }
   0x6   :  { %p156_p0 = scmp.ne.s32.totalorder %s128_s1, %s155_s13  ;;  %p160_p1 = scmp.lt.s32.totalorder %s128_s1, %s128_s1 }
   0x7   :  { %p161_p2 = scmp.lt.s32.totalorder %s159_s14, %s155_s13 }
   0x9   :  { %p162_p3 = por %p161_p2, %p160_p1 }
   0xb   :  { %v106_v26 = vld [vmem:[#allocation2] sm:$0x1]  ;;  %p163_p4 = pnand %p162_p3, %p156_p0 }
  0x1a   :  { %97 = vperm.xlu0 %150, %v73_v3  }
  0x8d   :  { %v84_v4 = vpop.xlane.xlu0 %83 }
  0x8e   :  { %v85_v5 = vsub.f32 %v72_v0, %v84_v4 }
  0x90   :  { %v86_v6 = vmul.f32 1.442695, %v85_v5 }
  0x92   :  { %151 = vpow2.f32 %v86_v6 }
  0x95   :  { %v98_v9 = vpop.permute.xlu0 %97 }
  0x96   :  { %vm99_vm1 = vcmp.eq.s32.totalorder %v95_v8, %v98_v9 }
  0x97   :  { %v100_v11 = vsel %vm99_vm1, %v72_v0, 0.0 }
  0x98   :  { %v101_v13 = vsel %vm81_vm0, %v100_v11, 0.0 }
  0x9f   :  { %v152_v10 = vpop.eup %151 }
  0xa0   :  { %v88_v12 = vsel %vm81_vm0, %v152_v10, 0.0 }
  0xa1   :  { %89 = vadd.xlane.f32.xlu1 %v88_v12 }
  0xa5   :  { %102 = vadd.xlane.f32.xlu1 %v101_v13 }
 0x12a   :  { %v90_v15 = vpop.xlane.xlu1 %89 }
 0x12b   :  { %153 = vlog2.f32 %v90_v15 }
 0x12e   :  { %v103_v18 = vpop.xlane.xlu1 %102 }
 0x138   :  { %v154_v16 = vpop.eup %153 }
 0x139   :  { %v92_v17 = vmul.f32 0.6931472, %v154_v16 }
 0x13b   :  { %v93_v19 = vadd.f32 %v92_v17, %v84_v4 }
 0x13d   :  { %v104_v20 = vsub.f32 %v93_v19, %v103_v18 }
 0x13f   :  { %v107_v21 = vrot.slane %v104_v20, 4 }
 0x141   :  { %v108_v22 = vadd.f32 %v107_v21, %v104_v20 }
 0x143   :  { %v109_v23 = vrot.slane %v108_v22, 2 }
 0x145   :  { %v110_v24 = vadd.f32 %v109_v23, %v108_v22 }
 0x147   :  { %v111_v25 = vrot.slane %v110_v24, 1 }
 0x149   :  { %v112_v27 = vadd.f32 %v111_v25, %v110_v24 }
 0x14b   :  { %v113_v28 = vadd.f32 %v112_v27, %v106_v26 }
 0x14d   :  { %115 = vst.msk [vmem:[#allocation2] sm:$0x1] %vm70_vm2, %v113_v28 }
 0x154   :  { %v119_v29 = vld [vmem:[#allocation2] sm:$0x1] }
 0x155   :  { %120 = vst.msk [vmem:[#allocation3] sm:$0x1] %vm70_vm2, %v119_v29 }
 0x156   :  { %166 = shalt.err (!%p163_p4)
}
 0x157   :  { %130 = dma.vmem_to_hbm [thread:$0]  %s128_s1, 16, %s212_s2, [#allocation4]  }
 0x158   :  { %175 = dma.done.wait [#allocation4], 16  }
 0x159   :  { %176 = vsyncadd [#allocation4], 4294967280 }
 0x15a   :  { %134 = vsyncpa [#allocation4], 1 }

</bundles_post_ra>
